<compile_context>
chip_gen: v6e
topology: v6e:2x2x1
jax: 0.10.0
libtpu: 0.0.40
codegen_flags: <defaults>
</compile_context>

<pallas_src>
import functools

import jax
import jax.numpy as jnp
from jax.experimental import pallas as pl
from jax.experimental.pallas import tpu as pltpu

EPS = 1e-5  # PyTorch nn.LayerNorm default eps

_ENC_COMPILER_PARAMS = pltpu.CompilerParams(
    dimension_semantics=("parallel",),
    vmem_limit_bytes=48 * 1024 * 1024,
)
# MLM head caches a prologue in scratch at grid step 0 -> keep the grid axis
# sequential ("arbitrary") so step 0 is guaranteed to run first.
_MLM_COMPILER_PARAMS = pltpu.CompilerParams(
    dimension_semantics=("arbitrary",),
    vmem_limit_bytes=48 * 1024 * 1024,
)


def _layernorm(x, gamma, beta):
    mu = jnp.mean(x, axis=-1, keepdims=True)
    var = jnp.mean((x - mu) * (x - mu), axis=-1, keepdims=True)
    return (x - mu) * jax.lax.rsqrt(var + EPS) * gamma + beta


# ----------------------------------------------------------------------------
# Kernel 1: fused transformer encoder block, one grid step per batch element.
#   (fused-QKV MHA -> AddNorm -> PositionWiseFFN -> AddNorm)
# ----------------------------------------------------------------------------
def encoder_block_kernel(num_heads,
                         x_ref,                       # (1, S, H) f32
                         wqkv_ref, bqkv_ref,          # (H, 3H) bf16, (1, 3H) f32
                         wo_ref, bo_ref,              # (H, H) bf16, (1, H) f32
                         ln1_g_ref, ln1_b_ref,        # (1, H) f32
                         w1_ref, b1_ref,              # (H, F) bf16, (1, F) f32
                         w2_ref, b2_ref,              # (F, H) bf16, (1, H) f32
                         ln2_g_ref, ln2_b_ref,        # (1, H) f32
                         o_ref):                      # (1, S, H) f32
    x = x_ref[0]                                      # (S, H) f32
    S, H = x.shape
    dh = H // num_heads
    scale = 1.0 / float(dh) ** 0.5

    # --- fused QKV projection: one wide bf16 MXU matmul, f32 accumulate ---
    qkv = (jnp.dot(x.astype(jnp.bfloat16), wqkv_ref[...],
                   preferred_element_type=jnp.float32)
           + bqkv_ref[...])                           # (S, 3H)

    # split Q/K/V, then heads (head h = columns [h*dh : (h+1)*dh], matching
    # PyTorch's reshape-based head split), batch-leading for batched einsum.
    q = qkv[:, 0 * H:1 * H].reshape(S, num_heads, dh).transpose(1, 0, 2)
    k = qkv[:, 1 * H:2 * H].reshape(S, num_heads, dh).transpose(1, 0, 2)
    v = qkv[:, 2 * H:3 * H].reshape(S, num_heads, dh).transpose(1, 0, 2)

    # fold the 1/sqrt(dh) scale into Q (S*H multiply instead of nh*S*S)
    q = q * scale

    # --- per-head scaled dot-product attention (no valid_lens mask) ---
    # TODO(synk): valid_lens masking + flash-style (q, kv) tiling for long S.
    scores = jnp.einsum('hqd,hkd->hqk',
                        q.astype(jnp.bfloat16), k.astype(jnp.bfloat16),
                        preferred_element_type=jnp.float32)
    scores = scores - jnp.max(scores, axis=-1, keepdims=True)
    p = jnp.exp(scores)
    p = p * pl.reciprocal(jnp.sum(p, axis=-1, keepdims=True), approx=True)
    ctx = jnp.einsum('hqk,hkd->hqd',
                     p.astype(jnp.bfloat16), v.astype(jnp.bfloat16),
                     preferred_element_type=jnp.float32)       # (nh, S, dh)
    ctx = ctx.transpose(1, 0, 2).reshape(S, H)                 # concat heads

    # --- single concat-heads output projection (K = H, not K = dh) ---
    attn = (jnp.dot(ctx.astype(jnp.bfloat16), wo_ref[...],
                    preferred_element_type=jnp.float32)
            + bo_ref[...])

    # --- AddNorm 1 ---
    y = _layernorm(x + attn, ln1_g_ref[...], ln1_b_ref[...])

    # --- PositionWiseFFN: Linear -> ReLU -> Linear (bf16 matmuls, f32 acc) ---
    ff = jnp.maximum(
        jnp.dot(y.astype(jnp.bfloat16), w1_ref[...],
                preferred_element_type=jnp.float32) + b1_ref[...],
        0.0)
    ff = (jnp.dot(ff.astype(jnp.bfloat16), w2_ref[...],
                  preferred_element_type=jnp.float32)
          + b2_ref[...])

    # --- AddNorm 2 ---
    o_ref[0] = _layernorm(y + ff, ln2_g_ref[...], ln2_b_ref[...])


def encoder_block(x, p, num_heads):
    B, S, H = x.shape
    F = p['w1'].shape[-1]

    def row_map(b):
        return (b, 0, 0)

    def const2(b):
        return (0, 0)

    in_specs = [
        pl.BlockSpec((1, S, H), row_map),          # x: one batch element / step
        pl.BlockSpec((H, 3 * H), const2),          # wqkv   (resident)
        pl.BlockSpec((1, 3 * H), const2),          # bqkv
        pl.BlockSpec((H, H), const2),              # wo
        pl.BlockSpec((1, H), const2),              # bo
        pl.BlockSpec((1, H), const2),              # ln1_g
        pl.BlockSpec((1, H), const2),              # ln1_b
        pl.BlockSpec((H, F), const2),              # w1
        pl.BlockSpec((1, F), const2),              # b1
        pl.BlockSpec((F, H), const2),              # w2
        pl.BlockSpec((1, H), const2),              # b2
        pl.BlockSpec((1, H), const2),              # ln2_g
        pl.BlockSpec((1, H), const2),              # ln2_b
    ]
    args = (x, p['wqkv'], p['bqkv'], p['wo'], p['bo'],
            p['ln1_g'], p['ln1_b'], p['w1'], p['b1'], p['w2'], p['b2'],
            p['ln2_g'], p['ln2_b'])
    return pl.pallas_call(
        functools.partial(encoder_block_kernel, num_heads),
        out_shape=jax.ShapeDtypeStruct((B, S, H), jnp.float32),
        grid=(B,),
        in_specs=in_specs,
        out_specs=pl.BlockSpec((1, S, H), row_map),
        compiler_params=_ENC_COMPILER_PARAMS,
    )(*args)


# ----------------------------------------------------------------------------
# Kernel 2: MaskLM MLP head, vocab-tiled:
#   Linear -> ReLU -> LayerNorm -> Linear(vocab tile)
# The H->H + LN prologue is computed once (grid step 0) into VMEM scratch
# (bf16, MXU-ready) and reused for every vocab tile.
# ----------------------------------------------------------------------------
def mlm_head_kernel(x_ref, w1_ref, b1_ref, g_ref, beta_ref, w2_ref, b2_ref,
                    o_ref, h_scratch):
    B, P, H = x_ref.shape

    @pl.when(pl.program_id(0) == 0)
    def _():
        x2 = x_ref[...].reshape(B * P, H)
        h = jnp.maximum(
            jnp.dot(x2.astype(jnp.bfloat16), w1_ref[...],
                    preferred_element_type=jnp.float32) + b1_ref[...],
            0.0)
        h = _layernorm(h, g_ref[...], beta_ref[...])
        h_scratch[...] = h.astype(jnp.bfloat16)

    y = (jnp.dot(h_scratch[...], w2_ref[...],
                 preferred_element_type=jnp.float32)
         + b2_ref[...])                                 # (B*P, tile_v)
    o_ref[...] = y.reshape(B, P, -1)


def _vocab_tile(v, cap=2048):
    if v <= cap:
        return v
    for t in range(cap - cap % 128, 0, -128):
        if v % t == 0:
            return t
    return v


def mlm_head(masked_x, p):
    B, P, H = masked_x.shape
    V = p['w2'].shape[-1]
    tn = _vocab_tile(V)
    grid = (V // tn,)

    args = (masked_x, p['w1'], p['b1'], p['ln_g'], p['ln_b'], p['w2'], p['b2'])
    in_specs = [
        pl.BlockSpec((B, P, H), lambda j: (0, 0, 0)),   # masked activations
        pl.BlockSpec((H, H), lambda j: (0, 0)),         # w1 (resident)
        pl.BlockSpec((1, H), lambda j: (0, 0)),         # b1
        pl.BlockSpec((1, H), lambda j: (0, 0)),         # ln_g
        pl.BlockSpec((1, H), lambda j: (0, 0)),         # ln_b
        pl.BlockSpec((H, tn), lambda j: (0, j)),        # w2: vocab-tiled
        pl.BlockSpec((1, tn), lambda j: (0, j)),        # b2: vocab-tiled
    ]
    return pl.pallas_call(
        mlm_head_kernel,
        out_shape=jax.ShapeDtypeStruct((B, P, V), jnp.float32),
        grid=grid,
        in_specs=in_specs,
        out_specs=pl.BlockSpec((B, P, tn), lambda j: (0, 0, j)),
        scratch_shapes=[pltpu.VMEM((B * P, H), jnp.bfloat16)],
        compiler_params=_MLM_COMPILER_PARAMS,
    )(*args)


# ----------------------------------------------------------------------------
# Full BERTModel forward (embedding / position gathers and the tiny pooled-CLS
# + NSP head are plain JAX glue — a 2-wide-output pallas_call would be pure
# launch overhead).
# ----------------------------------------------------------------------------
def bert_forward(params, tokens, segments, pred_positions, num_heads):
    S = tokens.shape[1]
    x = (params['tok_emb'][tokens]
         + params['seg_emb'][segments]
         + params['pos_emb'][:, :S, :])
    for lp in params['layers']:
        x = encoder_block(x, lp, num_heads)
    encoded = x

    # MaskLM gather (torch: X[batch_idx, pred_positions])
    B, _, H = encoded.shape
    P = pred_positions.shape[1]
    batch_idx = jnp.repeat(jnp.arange(B), P)
    masked = encoded[batch_idx, pred_positions.reshape(-1)].reshape(B, P, H)
    mlm_y_hat = mlm_head(masked, params['mlm'])

    # NextSentencePred on pooled [CLS]: hidden(Linear+Tanh) -> Linear(2).
    hp = params['head']
    cls = encoded[:, 0, :]
    pooled = jnp.tanh(cls @ hp['wh'] + hp['bh'])
    nsp_y_hat = pooled @ hp['wn'] + hp['bn']
    return encoded, mlm_y_hat, nsp_y_hat


# ----------------------------------------------------------------------------
# Deterministic parameter init (synthetic; shapes follow the module __init__).
# Matmul weights stored in bf16 (MXU-native), biases / LayerNorm params in f32.
# ----------------------------------------------------------------------------
def init_params(key, vocab, H, F, num_heads, num_layers, max_len):
    keys = jax.random.split(key, 6 + num_layers)

    def nrm(k, shape, dtype=jnp.float32):
        return (jax.random.normal(k, shape, jnp.float32) * 0.02).astype(dtype)

    bf16 = jnp.bfloat16
    params = {
        'tok_emb': nrm(keys[0], (vocab, H)),
        'seg_emb': nrm(keys[1], (2, H)),
        'pos_emb': nrm(keys[2], (1, max_len, H)),
        'layers': [],
    }
    for i in range(num_layers):
        k = jax.random.split(keys[3 + i], 6)
        params['layers'].append({
            # fused QKV: (H, 3H) = [W_q | W_k | W_v] column-wise
            'wqkv': nrm(k[0], (H, 3 * H), bf16),
            'bqkv': nrm(k[1], (1, 3 * H)),
            'wo': nrm(k[2], (H, H), bf16),
            'bo': nrm(k[3], (1, H)),
            'ln1_g': jnp.ones((1, H), jnp.float32),
            'ln1_b': jnp.zeros((1, H), jnp.float32),
            'w1': nrm(k[4], (H, F), bf16),
            'b1': jnp.zeros((1, F), jnp.float32),
            'w2': nrm(k[5], (F, H), bf16),
            'b2': jnp.zeros((1, H), jnp.float32),
            'ln2_g': jnp.ones((1, H), jnp.float32),
            'ln2_b': jnp.zeros((1, H), jnp.float32),
        })
    km = jax.random.split(keys[3 + num_layers], 4)
    params['mlm'] = {
        'w1': nrm(km[0], (H, H), bf16),
        'b1': jnp.zeros((1, H), jnp.float32),
        'ln_g': jnp.ones((1, H), jnp.float32),
        'ln_b': jnp.zeros((1, H), jnp.float32),
        'w2': nrm(km[1], (H, vocab), bf16),
        'b2': jnp.zeros((1, vocab), jnp.float32),
    }
    params['head'] = {
        'wh': nrm(km[2], (H, H)), 'bh': jnp.zeros((1, H), jnp.float32),
        'wn': nrm(km[3], (H, 2)), 'bn': jnp.zeros((1, 2), jnp.float32),
    }
    return params


if __name__ == "__main__":
    vocab_size = 128
    num_hiddens = 32
    ffn_num_hiddens = 64
    num_heads = 2
    num_layers = 2
    max_len = 16
    B, S = 2, 8

    key = jax.random.PRNGKey(0)
    pkey, tkey = jax.random.split(key)
    params = init_params(pkey, vocab_size, num_hiddens, ffn_num_hiddens,
                         num_heads, num_layers, max_len)

    tokens = jax.random.randint(tkey, (B, S), 0, vocab_size)
    segments = jnp.array([[0, 0, 0, 0, 1, 1, 1, 1],
                          [0, 0, 0, 1, 1, 1, 1, 1]], jnp.int32)
    pred_positions = jnp.array([[1, 5, 2], [6, 1, 5]], jnp.int32)

    fwd = jax.jit(functools.partial(bert_forward, num_heads=num_heads))
    encoded_X, mlm_Y_hat, nsp_Y_hat = fwd(params, tokens, segments, pred_positions)
    jax.block_until_ready((encoded_X, mlm_Y_hat, nsp_Y_hat))

    assert encoded_X.shape == (B, S, num_hiddens)
    assert mlm_Y_hat.shape == (B, 3, vocab_size)
    assert nsp_Y_hat.shape == (B, 2)
    assert bool(jnp.all(jnp.isfinite(encoded_X)))
    assert bool(jnp.all(jnp.isfinite(mlm_Y_hat)))
    assert bool(jnp.all(jnp.isfinite(nsp_Y_hat)))
    print("KERNEL_OK")
</pallas_src>

<mosaic_0001>
module attributes {stable_mosaic.version = 11 : i64} {
  func.func @encoder_block_kernel(%arg0: i32, %arg1: memref<1x8x32xf32, #tpu.memory_space<vmem>>, %arg2: memref<32x96xbf16, #tpu.memory_space<vmem>>, %arg3: memref<1x96xf32, #tpu.memory_space<vmem>>, %arg4: memref<32x32xbf16, #tpu.memory_space<vmem>>, %arg5: memref<1x32xf32, #tpu.memory_space<vmem>>, %arg6: memref<1x32xf32, #tpu.memory_space<vmem>>, %arg7: memref<1x32xf32, #tpu.memory_space<vmem>>, %arg8: memref<32x64xbf16, #tpu.memory_space<vmem>>, %arg9: memref<1x64xf32, #tpu.memory_space<vmem>>, %arg10: memref<64x32xbf16, #tpu.memory_space<vmem>>, %arg11: memref<1x32xf32, #tpu.memory_space<vmem>>, %arg12: memref<1x32xf32, #tpu.memory_space<vmem>>, %arg13: memref<1x32xf32, #tpu.memory_space<vmem>>, %arg14: memref<1x8x32xf32, #tpu.memory_space<vmem>>) attributes {dimension_semantics = [#tpu.dimension_semantics<parallel>], iteration_bounds = array<i64: 2>, scalar_prefetch = 0 : i64, scratch_operands = 0 : i64, tpu.core_type = #tpu.core_type<tc>, window_params = [{transform_indices = @transform_0, window_bounds = array<i64: 1, 8, 32>}, {pipeline_mode = #tpu.pipeline_mode<synchronous>, transform_indices = @transform_1, window_bounds = array<i64: 32, 96>}, {pipeline_mode = #tpu.pipeline_mode<synchronous>, transform_indices = @transform_2, window_bounds = array<i64: 1, 96>}, {pipeline_mode = #tpu.pipeline_mode<synchronous>, transform_indices = @transform_3, window_bounds = array<i64: 32, 32>}, {pipeline_mode = #tpu.pipeline_mode<synchronous>, transform_indices = @transform_4, window_bounds = array<i64: 1, 32>}, {pipeline_mode = #tpu.pipeline_mode<synchronous>, transform_indices = @transform_5, window_bounds = array<i64: 1, 32>}, {pipeline_mode = #tpu.pipeline_mode<synchronous>, transform_indices = @transform_6, window_bounds = array<i64: 1, 32>}, {pipeline_mode = #tpu.pipeline_mode<synchronous>, transform_indices = @transform_7, window_bounds = array<i64: 32, 64>}, {pipeline_mode = #tpu.pipeline_mode<synchronous>, transform_indices = @transform_8, window_bounds = array<i64: 1, 64>}, {pipeline_mode = #tpu.pipeline_mode<synchronous>, transform_indices = @transform_9, window_bounds = array<i64: 64, 32>}, {pipeline_mode = #tpu.pipeline_mode<synchronous>, transform_indices = @transform_10, window_bounds = array<i64: 1, 32>}, {pipeline_mode = #tpu.pipeline_mode<synchronous>, transform_indices = @transform_11, window_bounds = array<i64: 1, 32>}, {pipeline_mode = #tpu.pipeline_mode<synchronous>, transform_indices = @transform_12, window_bounds = array<i64: 1, 32>}, {transform_indices = @transform_13, window_bounds = array<i64: 1, 8, 32>}]} {
    %c0 = arith.constant 0 : index
    %c0_0 = arith.constant 0 : index
    %c0_1 = arith.constant 0 : index
    %0 = vector.load %arg1[%c0, %c0_0, %c0_1] : memref<1x8x32xf32, #tpu.memory_space<vmem>>, vector<1x8x32xf32>
    %1 = vector.shape_cast %0 : vector<1x8x32xf32> to vector<8x32xf32>
    %2 = arith.truncf %1 : vector<8x32xf32> to vector<8x32xbf16>
    %c0_2 = arith.constant 0 : index
    %c0_3 = arith.constant 0 : index
    %3 = vector.load %arg2[%c0_2, %c0_3] : memref<32x96xbf16, #tpu.memory_space<vmem>>, vector<32x96xbf16>
    %cst = arith.constant dense<0.000000e+00> : vector<8x96xf32>
    %4 = tpu.matmul %2, %3, %cst {dimension_numbers = #tpu.dot_dimension_numbers<[1], [0], [0], [1], [0, 0, 1, 1], [], []>} : vector<8x32xbf16>, vector<32x96xbf16>, vector<8x96xf32> -> vector<8x96xf32>
    %c0_4 = arith.constant 0 : index
    %c0_5 = arith.constant 0 : index
    %5 = vector.load %arg3[%c0_4, %c0_5] : memref<1x96xf32, #tpu.memory_space<vmem>>, vector<1x96xf32>
    %6 = vector.broadcast %5 : vector<1x96xf32> to vector<8x96xf32>
    %7 = arith.addf %4, %6 : vector<8x96xf32>
    %8 = vector.extract_strided_slice %7 {offsets = [0, 0], sizes = [8, 32], strides = [1, 1]} : vector<8x96xf32> to vector<8x32xf32>
    %9 = vector.shape_cast %8 : vector<8x32xf32> to vector<8x2x16xf32>
    %10 = tpu.transpose %9, [1, 0, 2] : vector<8x2x16xf32> -> vector<2x8x16xf32>
    %11 = vector.extract_strided_slice %7 {offsets = [0, 32], sizes = [8, 32], strides = [1, 1]} : vector<8x96xf32> to vector<8x32xf32>
    %12 = vector.shape_cast %11 : vector<8x32xf32> to vector<8x2x16xf32>
    %13 = tpu.transpose %12, [1, 0, 2] : vector<8x2x16xf32> -> vector<2x8x16xf32>
    %14 = vector.extract_strided_slice %7 {offsets = [0, 64], sizes = [8, 32], strides = [1, 1]} : vector<8x96xf32> to vector<8x32xf32>
    %15 = vector.shape_cast %14 : vector<8x32xf32> to vector<8x2x16xf32>
    %16 = tpu.transpose %15, [1, 0, 2] : vector<8x2x16xf32> -> vector<2x8x16xf32>
    %cst_6 = arith.constant 2.500000e-01 : f32
    %17 = vector.broadcast %cst_6 : f32 to vector<2x8x16xf32>
    %18 = arith.mulf %10, %17 : vector<2x8x16xf32>
    %19 = arith.truncf %18 : vector<2x8x16xf32> to vector<2x8x16xbf16>
    %20 = arith.truncf %13 : vector<2x8x16xf32> to vector<2x8x16xbf16>
    "tpu.trace_start"() <{level = 10 : i32, message = "hqd,hkd->hqk"}> : () -> ()
    %cst_7 = arith.constant dense<0.000000e+00> : vector<2x8x8xf32>
    %21 = tpu.matmul %19, %20, %cst_7 {dimension_numbers = #tpu.dot_dimension_numbers<[2], [2], [1], [1], [0, 0, 0, 1, 1, 1], [0], [0]>} : vector<2x8x16xbf16>, vector<2x8x16xbf16>, vector<2x8x8xf32> -> vector<2x8x8xf32>
    "tpu.trace_stop"() : () -> ()
    %cst_8 = arith.constant dense<0xFF800000> : vector<2x8xf32>
    %22 = vector.multi_reduction <maximumf>, %21, %cst_8 [2] : vector<2x8x8xf32> to vector<2x8xf32>
    %23 = vector.shape_cast %22 : vector<2x8xf32> to vector<2x8x1xf32>
    %24 = vector.broadcast %23 : vector<2x8x1xf32> to vector<2x8x8xf32>
    %25 = arith.subf %21, %24 : vector<2x8x8xf32>
    %26 = math.exp %25 : vector<2x8x8xf32>
    %cst_9 = arith.constant dense<0.000000e+00> : vector<2x8xf32>
    %27 = vector.multi_reduction <add>, %26, %cst_9 [2] : vector<2x8x8xf32> to vector<2x8xf32>
    %28 = vector.shape_cast %27 : vector<2x8xf32> to vector<2x8x1xf32>
    %29 = tpu.reciprocal %28 {approx = true} : vector<2x8x1xf32> -> vector<2x8x1xf32>
    %30 = vector.broadcast %29 : vector<2x8x1xf32> to vector<2x8x8xf32>
    %31 = arith.mulf %26, %30 : vector<2x8x8xf32>
    %32 = arith.truncf %31 : vector<2x8x8xf32> to vector<2x8x8xbf16>
    %33 = arith.truncf %16 : vector<2x8x16xf32> to vector<2x8x16xbf16>
    "tpu.trace_start"() <{level = 10 : i32, message = "hqk,hkd->hqd"}> : () -> ()
    %cst_10 = arith.constant dense<0.000000e+00> : vector<2x8x16xf32>
    %34 = tpu.matmul %32, %33, %cst_10 {dimension_numbers = #tpu.dot_dimension_numbers<[2], [1], [1], [2], [0, 0, 0, 1, 1, 2], [0], [0]>} : vector<2x8x8xbf16>, vector<2x8x16xbf16>, vector<2x8x16xf32> -> vector<2x8x16xf32>
    "tpu.trace_stop"() : () -> ()
    %35 = tpu.transpose %34, [1, 0, 2] : vector<2x8x16xf32> -> vector<8x2x16xf32>
    %36 = vector.shape_cast %35 : vector<8x2x16xf32> to vector<8x32xf32>
    %37 = arith.truncf %36 : vector<8x32xf32> to vector<8x32xbf16>
    %c0_11 = arith.constant 0 : index
    %c0_12 = arith.constant 0 : index
    %38 = vector.load %arg4[%c0_11, %c0_12] : memref<32x32xbf16, #tpu.memory_space<vmem>>, vector<32x32xbf16>
    %cst_13 = arith.constant dense<0.000000e+00> : vector<8x32xf32>
    %39 = tpu.matmul %37, %38, %cst_13 {dimension_numbers = #tpu.dot_dimension_numbers<[1], [0], [0], [1], [0, 0, 1, 1], [], []>} : vector<8x32xbf16>, vector<32x32xbf16>, vector<8x32xf32> -> vector<8x32xf32>
    %c0_14 = arith.constant 0 : index
    %c0_15 = arith.constant 0 : index
    %40 = vector.load %arg5[%c0_14, %c0_15] : memref<1x32xf32, #tpu.memory_space<vmem>>, vector<1x32xf32>
    %41 = vector.broadcast %40 : vector<1x32xf32> to vector<8x32xf32>
    %42 = arith.addf %39, %41 : vector<8x32xf32>
    %43 = arith.addf %1, %42 : vector<8x32xf32>
    %c0_16 = arith.constant 0 : index
    %c0_17 = arith.constant 0 : index
    %44 = vector.load %arg6[%c0_16, %c0_17] : memref<1x32xf32, #tpu.memory_space<vmem>>, vector<1x32xf32>
    %c0_18 = arith.constant 0 : index
    %c0_19 = arith.constant 0 : index
    %45 = vector.load %arg7[%c0_18, %c0_19] : memref<1x32xf32, #tpu.memory_space<vmem>>, vector<1x32xf32>
    %cst_20 = arith.constant dense<0.000000e+00> : vector<8xf32>
    %46 = vector.multi_reduction <add>, %43, %cst_20 [1] : vector<8x32xf32> to vector<8xf32>
    %47 = vector.shape_cast %46 : vector<8xf32> to vector<8x1xf32>
    %cst_21 = arith.constant 3.200000e+01 : f32
    %48 = vector.broadcast %cst_21 : f32 to vector<8x1xf32>
    %49 = arith.divf %47, %48 : vector<8x1xf32>
    %50 = vector.broadcast %49 : vector<8x1xf32> to vector<8x32xf32>
    %51 = arith.subf %43, %50 : vector<8x32xf32>
    %52 = vector.broadcast %49 : vector<8x1xf32> to vector<8x32xf32>
    %53 = arith.subf %43, %52 : vector<8x32xf32>
    %54 = arith.mulf %51, %53 : vector<8x32xf32>
    %cst_22 = arith.constant dense<0.000000e+00> : vector<8xf32>
    %55 = vector.multi_reduction <add>, %54, %cst_22 [1] : vector<8x32xf32> to vector<8xf32>
    %56 = vector.shape_cast %55 : vector<8xf32> to vector<8x1xf32>
    %cst_23 = arith.constant 3.200000e+01 : f32
    %57 = vector.broadcast %cst_23 : f32 to vector<8x1xf32>
    %58 = arith.divf %56, %57 : vector<8x1xf32>
    %59 = vector.broadcast %49 : vector<8x1xf32> to vector<8x32xf32>
    %60 = arith.subf %43, %59 : vector<8x32xf32>
    %cst_24 = arith.constant 9.99999974E-6 : f32
    %61 = vector.broadcast %cst_24 : f32 to vector<8x1xf32>
    %62 = arith.addf %58, %61 : vector<8x1xf32>
    %63 = math.rsqrt %62 : vector<8x1xf32>
    %64 = vector.broadcast %63 : vector<8x1xf32> to vector<8x32xf32>
    %65 = arith.mulf %60, %64 : vector<8x32xf32>
    %66 = vector.broadcast %44 : vector<1x32xf32> to vector<8x32xf32>
    %67 = arith.mulf %65, %66 : vector<8x32xf32>
    %68 = vector.broadcast %45 : vector<1x32xf32> to vector<8x32xf32>
    %69 = arith.addf %67, %68 : vector<8x32xf32>
    %70 = arith.truncf %69 : vector<8x32xf32> to vector<8x32xbf16>
    %c0_25 = arith.constant 0 : index
    %c0_26 = arith.constant 0 : index
    %71 = vector.load %arg8[%c0_25, %c0_26] : memref<32x64xbf16, #tpu.memory_space<vmem>>, vector<32x64xbf16>
    %cst_27 = arith.constant dense<0.000000e+00> : vector<8x64xf32>
    %72 = tpu.matmul %70, %71, %cst_27 {dimension_numbers = #tpu.dot_dimension_numbers<[1], [0], [0], [1], [0, 0, 1, 1], [], []>} : vector<8x32xbf16>, vector<32x64xbf16>, vector<8x64xf32> -> vector<8x64xf32>
    %c0_28 = arith.constant 0 : index
    %c0_29 = arith.constant 0 : index
    %73 = vector.load %arg9[%c0_28, %c0_29] : memref<1x64xf32, #tpu.memory_space<vmem>>, vector<1x64xf32>
    %74 = vector.broadcast %73 : vector<1x64xf32> to vector<8x64xf32>
    %75 = arith.addf %72, %74 : vector<8x64xf32>
    %cst_30 = arith.constant 0.000000e+00 : f32
    %76 = vector.broadcast %cst_30 : f32 to vector<8x64xf32>
    %77 = arith.maximumf %75, %76 : vector<8x64xf32>
    %78 = arith.truncf %77 : vector<8x64xf32> to vector<8x64xbf16>
    %c0_31 = arith.constant 0 : index
    %c0_32 = arith.constant 0 : index
    %79 = vector.load %arg10[%c0_31, %c0_32] : memref<64x32xbf16, #tpu.memory_space<vmem>>, vector<64x32xbf16>
    %cst_33 = arith.constant dense<0.000000e+00> : vector<8x32xf32>
    %80 = tpu.matmul %78, %79, %cst_33 {dimension_numbers = #tpu.dot_dimension_numbers<[1], [0], [0], [1], [0, 0, 1, 1], [], []>} : vector<8x64xbf16>, vector<64x32xbf16>, vector<8x32xf32> -> vector<8x32xf32>
    %c0_34 = arith.constant 0 : index
    %c0_35 = arith.constant 0 : index
    %81 = vector.load %arg11[%c0_34, %c0_35] : memref<1x32xf32, #tpu.memory_space<vmem>>, vector<1x32xf32>
    %82 = vector.broadcast %81 : vector<1x32xf32> to vector<8x32xf32>
    %83 = arith.addf %80, %82 : vector<8x32xf32>
    %84 = arith.addf %69, %83 : vector<8x32xf32>
    %c0_36 = arith.constant 0 : index
    %c0_37 = arith.constant 0 : index
    %85 = vector.load %arg12[%c0_36, %c0_37] : memref<1x32xf32, #tpu.memory_space<vmem>>, vector<1x32xf32>
    %c0_38 = arith.constant 0 : index
    %c0_39 = arith.constant 0 : index
    %86 = vector.load %arg13[%c0_38, %c0_39] : memref<1x32xf32, #tpu.memory_space<vmem>>, vector<1x32xf32>
    %cst_40 = arith.constant dense<0.000000e+00> : vector<8xf32>
    %87 = vector.multi_reduction <add>, %84, %cst_40 [1] : vector<8x32xf32> to vector<8xf32>
    %88 = vector.shape_cast %87 : vector<8xf32> to vector<8x1xf32>
    %cst_41 = arith.constant 3.200000e+01 : f32
    %89 = vector.broadcast %cst_41 : f32 to vector<8x1xf32>
    %90 = arith.divf %88, %89 : vector<8x1xf32>
    %91 = vector.broadcast %90 : vector<8x1xf32> to vector<8x32xf32>
    %92 = arith.subf %84, %91 : vector<8x32xf32>
    %93 = vector.broadcast %90 : vector<8x1xf32> to vector<8x32xf32>
    %94 = arith.subf %84, %93 : vector<8x32xf32>
    %95 = arith.mulf %92, %94 : vector<8x32xf32>
    %cst_42 = arith.constant dense<0.000000e+00> : vector<8xf32>
    %96 = vector.multi_reduction <add>, %95, %cst_42 [1] : vector<8x32xf32> to vector<8xf32>
    %97 = vector.shape_cast %96 : vector<8xf32> to vector<8x1xf32>
    %cst_43 = arith.constant 3.200000e+01 : f32
    %98 = vector.broadcast %cst_43 : f32 to vector<8x1xf32>
    %99 = arith.divf %97, %98 : vector<8x1xf32>
    %100 = vector.broadcast %90 : vector<8x1xf32> to vector<8x32xf32>
    %101 = arith.subf %84, %100 : vector<8x32xf32>
    %cst_44 = arith.constant 9.99999974E-6 : f32
    %102 = vector.broadcast %cst_44 : f32 to vector<8x1xf32>
    %103 = arith.addf %99, %102 : vector<8x1xf32>
    %104 = math.rsqrt %103 : vector<8x1xf32>
    %105 = vector.broadcast %104 : vector<8x1xf32> to vector<8x32xf32>
    %106 = arith.mulf %101, %105 : vector<8x32xf32>
    %107 = vector.broadcast %85 : vector<1x32xf32> to vector<8x32xf32>
    %108 = arith.mulf %106, %107 : vector<8x32xf32>
    %109 = vector.broadcast %86 : vector<1x32xf32> to vector<8x32xf32>
    %110 = arith.addf %108, %109 : vector<8x32xf32>
    %c0_45 = arith.constant 0 : index
    %c0_46 = arith.constant 0 : index
    %c0_47 = arith.constant 0 : index
    %111 = vector.load %arg14[%c0_45, %c0_46, %c0_47] : memref<1x8x32xf32, #tpu.memory_space<vmem>>, vector<1x8x32xf32>
    %112 = vector.shape_cast %111 : vector<1x8x32xf32> to vector<8x32xf32>
    %113 = vector.shape_cast %110 : vector<8x32xf32> to vector<1x8x32xf32>
    tpu.vector_store %arg14[%c0_45, %c0_46, %c0_47], %113 {strides = array<i32>} : memref<1x8x32xf32, #tpu.memory_space<vmem>>, vector<1x8x32xf32>,
    return
  }
  func.func @transform_0(%arg0: i32) -> (i32, i32, i32) {
    %c0_i32 = arith.constant 0 : i32
    %c0_i32_0 = arith.constant 0 : i32
    %c0_i32_1 = arith.constant 0 : i32
    return %arg0, %c0_i32, %c0_i32_0 : i32, i32, i32
  }
  func.func @transform_1(%arg0: i32) -> (i32, i32) {
    %c0_i32 = arith.constant 0 : i32
    %c0_i32_0 = arith.constant 0 : i32
    %c0_i32_1 = arith.constant 0 : i32
    return %c0_i32, %c0_i32_0 : i32, i32
  }
  func.func @transform_2(%arg0: i32) -> (i32, i32) {
    %c0_i32 = arith.constant 0 : i32
    %c0_i32_0 = arith.constant 0 : i32
    %c0_i32_1 = arith.constant 0 : i32
    return %c0_i32, %c0_i32_0 : i32, i32
  }
  func.func @transform_3(%arg0: i32) -> (i32, i32) {
    %c0_i32 = arith.constant 0 : i32
    %c0_i32_0 = arith.constant 0 : i32
    %c0_i32_1 = arith.constant 0 : i32
    return %c0_i32, %c0_i32_0 : i32, i32
  }
  func.func @transform_4(%arg0: i32) -> (i32, i32) {
    %c0_i32 = arith.constant 0 : i32
    %c0_i32_0 = arith.constant 0 : i32
    %c0_i32_1 = arith.constant 0 : i32
    return %c0_i32, %c0_i32_0 : i32, i32
  }
  func.func @transform_5(%arg0: i32) -> (i32, i32) {
    %c0_i32 = arith.constant 0 : i32
    %c0_i32_0 = arith.constant 0 : i32
    %c0_i32_1 = arith.constant 0 : i32
    return %c0_i32, %c0_i32_0 : i32, i32
  }
  func.func @transform_6(%arg0: i32) -> (i32, i32) {
    %c0_i32 = arith.constant 0 : i32
    %c0_i32_0 = arith.constant 0 : i32
    %c0_i32_1 = arith.constant 0 : i32
    return %c0_i32, %c0_i32_0 : i32, i32
  }
  func.func @transform_7(%arg0: i32) -> (i32, i32) {
    %c0_i32 = arith.constant 0 : i32
    %c0_i32_0 = arith.constant 0 : i32
    %c0_i32_1 = arith.constant 0 : i32
    return %c0_i32, %c0_i32_0 : i32, i32
  }
  func.func @transform_8(%arg0: i32) -> (i32, i32) {
    %c0_i32 = arith.constant 0 : i32
    %c0_i32_0 = arith.constant 0 : i32
    %c0_i32_1 = arith.constant 0 : i32
    return %c0_i32, %c0_i32_0 : i32, i32
  }
  func.func @transform_9(%arg0: i32) -> (i32, i32) {
    %c0_i32 = arith.constant 0 : i32
    %c0_i32_0 = arith.constant 0 : i32
    %c0_i32_1 = arith.constant 0 : i32
    return %c0_i32, %c0_i32_0 : i32, i32
  }
  func.func @transform_10(%arg0: i32) -> (i32, i32) {
    %c0_i32 = arith.constant 0 : i32
    %c0_i32_0 = arith.constant 0 : i32
    %c0_i32_1 = arith.constant 0 : i32
    return %c0_i32, %c0_i32_0 : i32, i32
  }
  func.func @transform_11(%arg0: i32) -> (i32, i32) {
    %c0_i32 = arith.constant 0 : i32
    %c0_i32_0 = arith.constant 0 : i32
    %c0_i32_1 = arith.constant 0 : i32
    return %c0_i32, %c0_i32_0 : i32, i32
  }
  func.func @transform_12(%arg0: i32) -> (i32, i32) {
    %c0_i32 = arith.constant 0 : i32
    %c0_i32_0 = arith.constant 0 : i32
    %c0_i32_1 = arith.constant 0 : i32
    return %c0_i32, %c0_i32_0 : i32, i32
  }
  func.func @transform_13(%arg0: i32) -> (i32, i32, i32) {
    %c0_i32 = arith.constant 0 : i32
    %c0_i32_0 = arith.constant 0 : i32
    %c0_i32_1 = arith.constant 0 : i32
    return %arg0, %c0_i32, %c0_i32_0 : i32, i32, i32
  }
}

module attributes {stable_mosaic.version = 11 : i64} {
  func.func @mlm_head_kernel(%arg0: i32, %arg1: memref<2x3x32xf32, #tpu.memory_space<vmem>>, %arg2: memref<32x32xbf16, #tpu.memory_space<vmem>>, %arg3: memref<1x32xf32, #tpu.memory_space<vmem>>, %arg4: memref<1x32xf32, #tpu.memory_space<vmem>>, %arg5: memref<1x32xf32, #tpu.memory_space<vmem>>, %arg6: memref<32x128xbf16, #tpu.memory_space<vmem>>, %arg7: memref<1x128xf32, #tpu.memory_space<vmem>>, %arg8: memref<2x3x128xf32, #tpu.memory_space<vmem>>, %arg9: memref<6x32xbf16, #tpu.memory_space<vmem>>) attributes {dimension_semantics = [#tpu.dimension_semantics<arbitrary>], iteration_bounds = array<i64: 1>, scalar_prefetch = 0 : i64, scratch_operands = 1 : i64, tpu.core_type = #tpu.core_type<tc>, window_params = [{pipeline_mode = #tpu.pipeline_mode<synchronous>, transform_indices = @transform_0, window_bounds = array<i64: 2, 3, 32>}, {pipeline_mode = #tpu.pipeline_mode<synchronous>, transform_indices = @transform_1, window_bounds = array<i64: 32, 32>}, {pipeline_mode = #tpu.pipeline_mode<synchronous>, transform_indices = @transform_2, window_bounds = array<i64: 1, 32>}, {pipeline_mode = #tpu.pipeline_mode<synchronous>, transform_indices = @transform_3, window_bounds = array<i64: 1, 32>}, {pipeline_mode = #tpu.pipeline_mode<synchronous>, transform_indices = @transform_4, window_bounds = array<i64: 1, 32>}, {transform_indices = @transform_5, window_bounds = array<i64: 32, 128>}, {transform_indices = @transform_6, window_bounds = array<i64: 1, 128>}, {transform_indices = @transform_7, window_bounds = array<i64: 2, 3, 128>}]} {
    %c0_i32 = arith.constant 0 : i32
    %0 = arith.cmpi eq, %arg0, %c0_i32 : i32
    %1 = arith.extui %0 : i1 to i32
    %c0_i32_0 = arith.constant 0 : i32
    %2 = arith.cmpi ne, %1, %c0_i32_0 : i32
    scf.if %2 {
      %c0_9 = arith.constant 0 : index
      %c0_10 = arith.constant 0 : index
      %c0_11 = arith.constant 0 : index
      %11 = vector.load %arg1[%c0_9, %c0_10, %c0_11] : memref<2x3x32xf32, #tpu.memory_space<vmem>>, vector<2x3x32xf32>
      %12 = vector.shape_cast %11 : vector<2x3x32xf32> to vector<6x32xf32>
      %13 = arith.truncf %12 : vector<6x32xf32> to vector<6x32xbf16>
      %c0_12 = arith.constant 0 : index
      %c0_13 = arith.constant 0 : index
      %14 = vector.load %arg2[%c0_12, %c0_13] : memref<32x32xbf16, #tpu.memory_space<vmem>>, vector<32x32xbf16>
      %cst_14 = arith.constant dense<0.000000e+00> : vector<6x32xf32>
      %15 = tpu.matmul %13, %14, %cst_14 {dimension_numbers = #tpu.dot_dimension_numbers<[1], [0], [0], [1], [0, 0, 1, 1], [], []>} : vector<6x32xbf16>, vector<32x32xbf16>, vector<6x32xf32> -> vector<6x32xf32>
      %c0_15 = arith.constant 0 : index
      %c0_16 = arith.constant 0 : index
      %16 = vector.load %arg3[%c0_15, %c0_16] : memref<1x32xf32, #tpu.memory_space<vmem>>, vector<1x32xf32>
      %17 = vector.broadcast %16 : vector<1x32xf32> to vector<6x32xf32>
      %18 = arith.addf %15, %17 : vector<6x32xf32>
      %cst_17 = arith.constant 0.000000e+00 : f32
      %19 = vector.broadcast %cst_17 : f32 to vector<6x32xf32>
      %20 = arith.maximumf %18, %19 : vector<6x32xf32>
      %c0_18 = arith.constant 0 : index
      %c0_19 = arith.constant 0 : index
      %21 = vector.load %arg4[%c0_18, %c0_19] : memref<1x32xf32, #tpu.memory_space<vmem>>, vector<1x32xf32>
      %c0_20 = arith.constant 0 : index
      %c0_21 = arith.constant 0 : index
      %22 = vector.load %arg5[%c0_20, %c0_21] : memref<1x32xf32, #tpu.memory_space<vmem>>, vector<1x32xf32>
      %cst_22 = arith.constant dense<0.000000e+00> : vector<6xf32>
      %23 = vector.multi_reduction <add>, %20, %cst_22 [1] : vector<6x32xf32> to vector<6xf32>
      %24 = vector.shape_cast %23 : vector<6xf32> to vector<6x1xf32>
      %cst_23 = arith.constant 3.200000e+01 : f32
      %25 = vector.broadcast %cst_23 : f32 to vector<6x1xf32>
      %26 = arith.divf %24, %25 : vector<6x1xf32>
      %27 = vector.broadcast %26 : vector<6x1xf32> to vector<6x32xf32>
      %28 = arith.subf %20, %27 : vector<6x32xf32>
      %29 = vector.broadcast %26 : vector<6x1xf32> to vector<6x32xf32>
      %30 = arith.subf %20, %29 : vector<6x32xf32>
      %31 = arith.mulf %28, %30 : vector<6x32xf32>
      %cst_24 = arith.constant dense<0.000000e+00> : vector<6xf32>
      %32 = vector.multi_reduction <add>, %31, %cst_24 [1] : vector<6x32xf32> to vector<6xf32>
      %33 = vector.shape_cast %32 : vector<6xf32> to vector<6x1xf32>
      %cst_25 = arith.constant 3.200000e+01 : f32
      %34 = vector.broadcast %cst_25 : f32 to vector<6x1xf32>
      %35 = arith.divf %33, %34 : vector<6x1xf32>
      %36 = vector.broadcast %26 : vector<6x1xf32> to vector<6x32xf32>
      %37 = arith.subf %20, %36 : vector<6x32xf32>
      %cst_26 = arith.constant 9.99999974E-6 : f32
      %38 = vector.broadcast %cst_26 : f32 to vector<6x1xf32>
      %39 = arith.addf %35, %38 : vector<6x1xf32>
      %40 = math.rsqrt %39 : vector<6x1xf32>
      %41 = vector.broadcast %40 : vector<6x1xf32> to vector<6x32xf32>
      %42 = arith.mulf %37, %41 : vector<6x32xf32>
      %43 = vector.broadcast %21 : vector<1x32xf32> to vector<6x32xf32>
      %44 = arith.mulf %42, %43 : vector<6x32xf32>
      %45 = vector.broadcast %22 : vector<1x32xf32> to vector<6x32xf32>
      %46 = arith.addf %44, %45 : vector<6x32xf32>
      %47 = arith.truncf %46 : vector<6x32xf32> to vector<6x32xbf16>
      %c0_27 = arith.constant 0 : index
      %c0_28 = arith.constant 0 : index
      %48 = vector.load %arg9[%c0_27, %c0_28] : memref<6x32xbf16, #tpu.memory_space<vmem>>, vector<6x32xbf16>
      tpu.vector_store %arg9[%c0_27, %c0_28], %47 {strides = array<i32>} : memref<6x32xbf16, #tpu.memory_space<vmem>>, vector<6x32xbf16>,
    } else {
    }
    %c0 = arith.constant 0 : index
    %c0_1 = arith.constant 0 : index
    %3 = vector.load %arg9[%c0, %c0_1] : memref<6x32xbf16, #tpu.memory_space<vmem>>, vector<6x32xbf16>
    %c0_2 = arith.constant 0 : index
    %c0_3 = arith.constant 0 : index
    %4 = vector.load %arg6[%c0_2, %c0_3] : memref<32x128xbf16, #tpu.memory_space<vmem>>, vector<32x128xbf16>
    %cst = arith.constant dense<0.000000e+00> : vector<6x128xf32>
    %5 = tpu.matmul %3, %4, %cst {dimension_numbers = #tpu.dot_dimension_numbers<[1], [0], [0], [1], [0, 0, 1, 1], [], []>} : vector<6x32xbf16>, vector<32x128xbf16>, vector<6x128xf32> -> vector<6x128xf32>
    %c0_4 = arith.constant 0 : index
    %c0_5 = arith.constant 0 : index
    %6 = vector.load %arg7[%c0_4, %c0_5] : memref<1x128xf32, #tpu.memory_space<vmem>>, vector<1x128xf32>
    %7 = vector.broadcast %6 : vector<1x128xf32> to vector<6x128xf32>
    %8 = arith.addf %5, %7 : vector<6x128xf32>
    %9 = vector.shape_cast %8 : vector<6x128xf32> to vector<2x3x128xf32>
    %c0_6 = arith.constant 0 : index
    %c0_7 = arith.constant 0 : index
    %c0_8 = arith.constant 0 : index
    %10 = vector.load %arg8[%c0_6, %c0_7, %c0_8] : memref<2x3x128xf32, #tpu.memory_space<vmem>>, vector<2x3x128xf32>
    tpu.vector_store %arg8[%c0_6, %c0_7, %c0_8], %9 {strides = array<i32>} : memref<2x3x128xf32, #tpu.memory_space<vmem>>, vector<2x3x128xf32>,
    return
  }
  func.func @transform_0(%arg0: i32) -> (i32, i32, i32) {
    %c0_i32 = arith.constant 0 : i32
    %c0_i32_0 = arith.constant 0 : i32
    %c0_i32_1 = arith.constant 0 : i32
    %c0_i32_2 = arith.constant 0 : i32
    return %c0_i32, %c0_i32_0, %c0_i32_1 : i32, i32, i32
  }
  func.func @transform_1(%arg0: i32) -> (i32, i32) {
    %c0_i32 = arith.constant 0 : i32
    %c0_i32_0 = arith.constant 0 : i32
    %c0_i32_1 = arith.constant 0 : i32
    return %c0_i32, %c0_i32_0 : i32, i32
  }
  func.func @transform_2(%arg0: i32) -> (i32, i32) {
    %c0_i32 = arith.constant 0 : i32
    %c0_i32_0 = arith.constant 0 : i32
    %c0_i32_1 = arith.constant 0 : i32
    return %c0_i32, %c0_i32_0 : i32, i32
  }
  func.func @transform_3(%arg0: i32) -> (i32, i32) {
    %c0_i32 = arith.constant 0 : i32
    %c0_i32_0 = arith.constant 0 : i32
    %c0_i32_1 = arith.constant 0 : i32
    return %c0_i32, %c0_i32_0 : i32, i32
  }
  func.func @transform_4(%arg0: i32) -> (i32, i32) {
    %c0_i32 = arith.constant 0 : i32
    %c0_i32_0 = arith.constant 0 : i32
    %c0_i32_1 = arith.constant 0 : i32
    return %c0_i32, %c0_i32_0 : i32, i32
  }
  func.func @transform_5(%arg0: i32) -> (i32, i32) {
    %c0_i32 = arith.constant 0 : i32
    %c0_i32_0 = arith.constant 0 : i32
    return %c0_i32, %arg0 : i32, i32
  }
  func.func @transform_6(%arg0: i32) -> (i32, i32) {
    %c0_i32 = arith.constant 0 : i32
    %c0_i32_0 = arith.constant 0 : i32
    return %c0_i32, %arg0 : i32, i32
  }
  func.func @transform_7(%arg0: i32) -> (i32, i32, i32) {
    %c0_i32 = arith.constant 0 : i32
    %c0_i32_0 = arith.constant 0 : i32
    %c0_i32_1 = arith.constant 0 : i32
    return %c0_i32, %c0_i32_0, %arg0 : i32, i32, i32
  }
}

</mosaic_0001>

<bundles_post_ra>
// kernel: bert_forward.5
= control target key start
LH: loop header
LB: loop body
LE: loop exit
PB: predicated region body
PF: predicated region fallthrough
CT: control target
= control target key end

     0   :  { %v46_v0 = vlaneseq  ;;  %v440_v1 = vmov 0.0   ;;  %vm441_vm0 = vmmov 0   ;;  %v442_v3 = vmov 1966171168   ;;  %s542_s1 = inlined_call_operand.vmem [shape: bf16[32,32], index: 1, kind: input, shape index: {}]   ;;  %s543_s0 = inlined_call_operand.vmem [shape: f32[2,3,32], index: 0, kind: input, shape index: {}]   ;;  %s544_s2 = inlined_call_operand.vmem [shape: f32[1,32], index: 2, kind: input, shape index: {}]   ;;  %s545_s5 = inlined_call_operand.vmem [shape: bf16[32,128], index: 5, kind: input, shape index: {}]   ;;  %s546_s3 = inlined_call_operand.vmem [shape: f32[1,32], index: 3, kind: input, shape index: {}]   ;;  %s547_s4 = inlined_call_operand.vmem [shape: f32[1,32], index: 4, kind: input, shape index: {}]   ;;  %s548_s6 = inlined_call_operand.vmem [shape: f32[1,128], index: 6, kind: input, shape index: {}]   ;;  %s549_s7 = inlined_call_operand.vmem [shape: f32[2,3,128], index: 7, kind: output, shape index: {}]  }
   0x1   :  { %415 = vmatprep.subr.bf16.mxu0 %v440_v1  ;;  %v434_v2 = vld [vmem:[%s542_s1 + $0x8] sm:$0xff]   ;;  %419 = vmatprep.mubr.msk.bf16.mxu0 %vm441_vm0, %v440_v1  ;;  %v44_v4 = vunpack.c.l.s4 %v442_v3  ;;  %v435_v6 = vld [vmem:[%s542_s1] sm:$0xff]   ;;  %vm146_vm1 = vcmask 261120   ;;  %vm193_vm2 = vcmask 259072   ;;  %vm223_vm3 = vcmask 256000  }
   0x2   :  { %v47_v5 = vshrl.u32 %v46_v0, 7  ;;  %423 = vmatprep.subr.bf16.mxu1 %v440_v1  ;;  %427 = vmatprep.mubr.msk.bf16.mxu1 %vm441_vm0, %v440_v1  ;;  %v395_v7 = vld.sshfl [vmem:[%s543_s0] sm:$0x13 pattern:$0x75316420]  ;;  %v436_v43 = vld [vmem:[%s545_s5 + $0x8] sm:$0xff]  }
   0x3   :  { %416 = vmatpush3.bf16.msra.mxu0 %v434_v2  ;;  %v45_v8 = vunpack.c.0.s8 %v44_v4  ;;  %v396_v9 = vld.sshfl [vmem:[%s543_s0 + $0x4] sm:$0x13 pattern:$0x75316420]  ;;  %v42_v10 = vcombine.high %v395_v7, %v395_v7  ;;  %v397_v30 = vld [vmem:[%s544_s2] ss:$0 sm:$0xff]  ;;  %424 = vmatpush3.bf16.msra.mxu1 %v436_v43 }
   0x4   :  { %417 = vmatprep.subr.bf16.mxu0 %v440_v1  ;;  %v65_v12 = vcombine.high %v396_v9, %v396_v9  ;;  %v437_v44 = vld [vmem:[%s545_s5] sm:$0xff]   ;;  %425 = vmatprep.subr.bf16.mxu1 %v440_v1 }
   0x5   :  { %v495_v11 = vsub.s32 %v45_v8, %v47_v5  ;;  %v401_v49 = vld [vmem:[%s546_s3] ss:$0 sm:$0xff] }
   0x6   :  { %v402_v51 = vld [vmem:[%s547_s4] ss:$0 sm:$0xff] }
   0x7   :  { %418 = vmatpush3.bf16.msra.mxu0 %v435_v6  ;;  %v49_v13 = vrot.slane %v395_v7, %v495_v11  ;;  %v56_v14 = vrot.slane %v42_v10, %v495_v11  ;;  %v72_v15 = vrot.slane %v396_v9, %v495_v11  ;;  %v79_v16 = vrot.slane %v65_v12, %v495_v11  ;;  %v403_v56 = vld [vmem:[%s548_s6] ss:$0 sm:$0xff] }
   0x8   :  { %426 = vmatpush3.bf16.msra.mxu1 %v437_v44 }
   0x9   :  { %v57_v17 = vcombine.high %v49_v13, %v49_v13  ;;  %v80_v18 = vcombine.high %v72_v15, %v72_v15  ;;  %v81_v19 = vcombine.low %v49_v13, %v56_v14 }
   0xb   :  { %v82_v20 = vcombine.low %v57_v17, %v72_v15  ;;  %v83_v21 = vcombine.low %v79_v16, %v80_v18  ;;  %v90_v22 = vrot.slane %v81_v19, %v495_v11 }
   0xd   :  { %v97_v23 = vrot.slane %v82_v20, %v495_v11  ;;  %v104_v24 = vrot.slane %v83_v21, %v495_v11 }
   0xf   :  { %v105_v25 = vcombine.low %v90_v22, %v97_v23  ;;  %v119_v26 = vrot.slane %v104_v24, %v495_v11 }
  0x11   :  { %v112_v27 = vrot.slane %v105_v25, %v495_v11 }
  0x13   :  { %v120_v28 = vcombine.low %v112_v27, %v119_v26 }
  0x15   :  { %v122_v29 = vpack.c.bf16 %v120_v28, %v120_v28 }
  0x17   :  { %420 = vmatmul.mubr.msk.bf16.vlgmr.msra.gmra.mxu0 %vm146_vm1, %v122_v29 }
  0xd7   :  { %v184_v31 = vpop.f32.mrf.mxu0 }
  0xd8   :  { %v185_v32 = vadd.f32 %v397_v30, %v184_v31 }
  0xd9   :  { %v421_v33 = vpop.f32.mrf.mxu0 }
  0xda   :  { %v190_v34 = vmax.f32 %v185_v32, 0.0 }
  0xdb   :  { %v187_v35 = vpop.f32.mrf.mxu0 }
  0xdc   :  { %v194_v36 = vsel %vm193_vm2, %v190_v34, 0.0 }
  0xdd   :  { %195 = vadd.xlane.f32.xlu0 %v194_v36  ;;  %v422_v37 = vpop.f32.mrf.mxu0 }
 0x166   :  { %v196_v38 = vpop.xlane.xlu0 %195 }
 0x167   :  { %v198_v39 = vmul.f32 0.03125, %v196_v38 }
 0x169   :  { %v199_v40 = vsub.f32 %v190_v34, %v198_v39 }
 0x16b   :  { %v200_v41 = vmul.f32 %v199_v40, %v199_v40 }
 0x16d   :  { %v201_v42 = vsel %vm193_vm2, %v200_v41, 0.0 }
 0x16e   :  { %202 = vadd.xlane.f32.xlu0 %v201_v42 }
 0x1f7   :  { %v203_v45 = vpop.xlane.xlu0 %202 }
 0x1f8   :  { %v204_v46 = vmul.f32 0.03125, %v203_v45 }
 0x1fa   :  { %v205_v47 = vadd.f32 1e-05, %v204_v46 }
 0x1fc   :  { %438 = vrsqrt.f32 %v205_v47 }
 0x209   :  { %v439_v48 = vpop.eup %438 }
 0x20a   :  { %v207_v50 = vmul.f32 %v439_v48, %v199_v40 }
 0x20c   :  { %v214_v52 = vmul.f32 %v401_v49, %v207_v50 }
 0x20e   :  { %v221_v53 = vadd.f32 %v402_v51, %v214_v52 }
 0x210   :  { %v222_v54 = vpack.c.bf16 %v221_v53, %v221_v53 }
 0x212   :  { %224 = vst.msk [vmem:[#allocation2] sm:$0x7] %vm223_vm3, %v222_v54 }
 0x219   :  { %v225_v55 = vld [vmem:[#allocation2] sm:$0x7] }
 0x21a   :  { %428 = vmatmul.mubr.msk.bf16.vlgmr.msra.gmra.mxu1 %vm146_vm1, %v225_v55 }
 0x2da   :  { %v287_v57 = vpop.f32.mrf.mxu1 }
 0x2db   :  { %v288_v58 = vadd.f32 %v403_v56, %v287_v57 }
 0x2dc   :  { %v429_v59 = vpop.f32.mrf.mxu1 }
 0x2dd   :  { %v294_v60 = vcombine.high %v288_v58, %v288_v58  ;;  %v301_v61 = vrot.slane %v288_v58, %v495_v11 }
 0x2de   :  { %v290_v62 = vpop.f32.mrf.mxu1 }
 0x2df   :  { %v308_v63 = vrot.slane %v294_v60, %v495_v11  ;;  %v309_v0 = vcombine.high %v301_v61, %v301_v61  ;;  %v317_v1 = vrot.slane %v301_v61, %v495_v11 }
 0x2e0   :  { %v430_v2 = vpop.f32.mrf.mxu1 }
 0x2e1   :  { %v310_v3 = vcombine.high %v308_v63, %v308_v63  ;;  %v331_v4 = vrot.slane %v309_v0, %v495_v11  ;;  %v339_v5 = vcombine.high %v317_v1, %v317_v1  ;;  %v324_v6 = vrot.slane %v308_v63, %v495_v11 }
 0x2e3   :  { %v338_v7 = vrot.slane %v310_v3, %v495_v11  ;;  %v340_v8 = vcombine.high %v331_v4, %v331_v4  ;;  %v341_v9 = vcombine.low %v317_v1, %v331_v4  ;;  %v355_v12 = vrot.slane %v339_v5, %v495_v11 }
 0x2e5   :  { %v348_v10 = vrot.slane %v341_v9, %v495_v11  ;;  %v364_v13 = vcombine.low %v340_v8, %v324_v6  ;;  %v378_v16 = vrot.slane %v338_v7, %v495_v11 }
 0x2e7   :  { %v356_v14 = vcombine.low %v348_v10, %v355_v12  ;;  %v371_v15 = vrot.slane %v364_v13, %v495_v11 }
 0x2e9   :  { %v379_v17 = vcombine.low %v371_v15, %v378_v16  ;;  %407 = vst.sshfl [vmem:[%s549_s7] sm:$0x15 pattern:$0x73625140] %v356_v14 }
 0x2eb   :  { %408 = vst.sshfl [vmem:[%s549_s7 + $0x4] sm:$0x15 pattern:$0x73625140] %v379_v17 }

// kernel: bert_forward.3
= control target key start
LH: loop header
LB: loop body
LE: loop exit
PB: predicated region body
PF: predicated region fallthrough
CT: control target
= control target key end

     0   :  { %s1793_s25 = smov 0   ;;  %s2006_s0 = inlined_call_operand.vmem [shape: f32[2,8,32], index: 0, kind: input, shape index: {}]   ;;  %s2007_s1 = inlined_call_operand.vmem [shape: bf16[32,96], index: 1, kind: input, shape index: {}]   ;;  %s2008_s2 = inlined_call_operand.vmem [shape: f32[1,96], index: 2, kind: input, shape index: {}]   ;;  %s2009_s3 = inlined_call_operand.vmem [shape: bf16[32,32], index: 3, kind: input, shape index: {}]   ;;  %s2010_s4 = inlined_call_operand.vmem [shape: f32[1,32], index: 4, kind: input, shape index: {}]   ;;  %s2011_s5 = inlined_call_operand.vmem [shape: f32[1,32], index: 5, kind: input, shape index: {}]   ;;  %s2012_s6 = inlined_call_operand.vmem [shape: f32[1,32], index: 6, kind: input, shape index: {}]   ;;  %s2013_s7 = inlined_call_operand.vmem [shape: bf16[32,64], index: 7, kind: input, shape index: {}]   ;;  %s2014_s8 = inlined_call_operand.vmem [shape: f32[1,64], index: 8, kind: input, shape index: {}]   ;;  %s2015_s9 = inlined_call_operand.vmem [shape: bf16[64,32], index: 9, kind: input, shape index: {}]   ;;  %s2016_s10 = inlined_call_operand.vmem [shape: f32[1,32], index: 10, kind: input, shape index: {}]   ;;  %s2017_s11 = inlined_call_operand.vmem [shape: f32[1,32], index: 11, kind: input, shape index: {}]   ;;  %s2018_s12 = inlined_call_operand.vmem [shape: f32[1,32], index: 12, kind: input, shape index: {}]   ;;  %s2019_s13 = inlined_call_operand.vmem [shape: f32[2,8,32], index: 13, kind: output, shape index: {}]  }
   0x1 LB: > { %s1544_s26 = sadd.s32 4294967295, %s1713_s25   ;;  %p1548_p0 = scmp.ge.s32.totalorder %s1713_s25, 1  ;;  %s1713_s25 = sphi %s1793_s25, %s23_s25  }
   0x2   : > { %p386_p1 = scmp.lt.s32.totalorder %s1713_s25, 3 }
   0x4   : > { %p387_p2 = pnand %p1548_p0, %p386_p1 }
   0x5   : > { %p428_p3 = scmp.lt.s32.totalorder (!%p387_p2), %s1544_s26, 1  ;;  %s1717_s20 = smov (!%p387_p2), 112  }
   0x6   : > { %390 = sbr.rel (%p387_p2) target bundleno = 2532 (0x9e4), region = 72  ;;  %s1718_s21 = smov (!%p387_p2), 96  }
   0x7   : > { %s1721_s22 = smov (!%p387_p2), 64   ;;  %s1722_s29 = smov (!%p387_p2), 16  }
   0xb   : > { %v1685_v0 = vld [vmem:[%s2007_s1 + $0x8] sm:$0xff]   ;;  %v1715_v1 = vmov 0.0   ;;  %v1686_v2 = vld [vmem:[%s2007_s1] sm:$0xff]   ;;  %vm1716_vm0 = vmmov 0   ;;  %s2021_s26 = smov (!%p428_p3, %s1544_s26), 1  ;;  %vm462_vm1 = vcmask 261120   ;;  %v514_v14 = vlaneseq }
   0xc   : > { %1609 = vmatprep.subr.bf16.mxu0 %v1715_v1  ;;  %1617 = vmatprep.subr.bf16.mxu1 %v1715_v1  ;;  %s1549_s14 = sshll.u32 %s2021_s26, 3  ;;  %v1551_v5 = vld [vmem:[%s2008_s2] ss:$0 sm:$0xff]  ;;  %v1719_v12 = vmov 1983009808   ;;  %vm876_vm2 = vcmask 130048  }
   0xd   : > { %1610 = vmatpush3.bf16.msra.mxu0 %v1685_v0  ;;  %1613 = vmatprep.mubr.msk.bf16.mxu0 %vm1716_vm0, %v1715_v1  ;;  %s431_s17 = scalar_lea.vmem %s2006_s0, %s1549_s14  ;;  %v512_v13 = vunpack.c.l.s4 %v1719_v12  ;;  %v515_v16 = vshrl.u32 %v514_v14, 7  ;;  %v1720_v20 = vmov 1934713408   ;;  %vm969_vm3 = vcmask 64512   ;;  %s435_s30 = scalar_lea.vmem %s2019_s13, %s1549_s14 }
   0xe   : > { %1611 = vmatprep.subr.bf16.mxu0 %v1715_v1  ;;  %1619 = vmatprep.mubr.msk.bf16.mxu1 %vm1716_vm0, %v1715_v1  ;;  %v1823_v3 = vld [vmem:[%s431_s17] sm:$0xff]  ;;  %v543_v21 = vunpack.c.l.s4 %v1720_v20  ;;  %vm999_vm4 = vcmask 1043456   ;;  %vm1416_vm5 = vcmask 523264  }
   0xf   : > { %v438_v4 = vpack.c.bf16 %v1823_v3, %v1823_v3  ;;  %v513_v15 = vunpack.c.0.s8 %v512_v13 }
  0x10   : > { %v544_v23 = vunpack.c.0.s8 %v543_v21 }
  0x11   : > { %1612 = vmatpush3.bf16.msra.mxu0 %v1686_v2  ;;  %v1844_v19 = vsub.s32 %v513_v15, %v515_v16 }
  0x12   : > { %1623 = vmatprep.subr.bf16.mxu0 %v1715_v1  ;;  %v1852_v29 = vsub.s32 %v544_v23, %v515_v16 }
  0x14   : > { %1614 = vmatmul.mubr.msk.bf16.vlgmr.msra.gmra.mxu0 %vm462_vm1, %v438_v4 }
  0x15   : > { %1625 = vmatprep.mubr.msk.bf16.mxu0 %vm1716_vm0, %v1715_v1 }
  0xd4   : > { %v500_v6 = vpop.f32.mrf.mxu0 }
  0xd5   : > { %v1833_v7 = vadd.f32 %v1551_v5, %v500_v6 }
  0xd6   : > { %v1615_v8 = vpop.f32.mrf.mxu0 }
  0xd7   : > { %507 = vrot.lane.b32.xlu0 %v1833_v7, %s1717_s20  ;;  %v510_v18 = vcombine.high %v1833_v7, %v1715_v1  ;;  %v517_v26 = vrot.slane %v1833_v7, %v1844_v19 }
  0xd8   : > { %v503_v9 = vpop.f32.mrf.mxu0 }
  0xd9   : > { %v524_v24 = vrot.slane %v510_v18, %v1844_v19 }
  0xda   : > { %v1616_v10 = vpop.f32.mrf.mxu0 }
  0xdb   : > { %626 = vrot.lane.b32.xlu0 %v1833_v7, %s1718_s21 }
 0x149   : > { %v1837_v11 = vpop.permute.xlu0 %507 }
 0x14a   : > { %628 = vrot.lane.b32.xlu1 %v1837_v11, %s1718_s21  ;;  %v525_v17 = vcombine.high %v1837_v11, %v1715_v1  ;;  %v532_v25 = vrot.slane %v1837_v11, %v1844_v19 }
 0x14c   : > { %v539_v22 = vrot.slane %v525_v17, %v1844_v19  ;;  %v540_v30 = vcombine.low %v517_v26, %v532_v25  ;;  %v541_v31 = vcombine.high %v517_v26, %v532_v25 }
 0x14d   : > { %v627_v32 = vpop.permute.xlu0 %626 }
 0x14e   : > { %v556_v27 = vcombine.low %v524_v24, %v539_v22  ;;  %v557_v28 = vcombine.high %v524_v24, %v539_v22  ;;  %v632_v35 = vcombine.high %v627_v32, %v1715_v1  ;;  %v548_v36 = vrot.slane %v540_v30, %v1852_v29 }
 0x14f   : > { %v555_v37 = vrot.slane %v541_v31, %v1852_v29  ;;  %v639_v39 = vrot.slane %v627_v32, %v1844_v19 }
 0x150   : > { %v564_v33 = vrot.slane %v556_v27, %v1852_v29  ;;  %v571_v34 = vrot.slane %v557_v28, %v1852_v29  ;;  %v646_v44 = vrot.slane %v632_v35, %v1844_v19 }
 0x151   : > { %v576_v48 = vcombine.low %v548_v36, %v555_v37  ;;  %v1555_v49 = vcombine.high %v548_v36, %v555_v37 }
 0x152   : > { %v592_v42 = vcombine.low %v564_v33, %v571_v34  ;;  %v1556_v43 = vcombine.high %v564_v33, %v571_v34 }
 0x153   : > { %v583_v60 = vrot.slane %v576_v48, %v1844_v19  ;;  %v591_v61 = vrot.slane %v1555_v49, %v1844_v19 }
 0x154   : > { %v599_v54 = vrot.slane %v592_v42, %v1844_v19  ;;  %v607_v55 = vrot.slane %v1556_v43, %v1844_v19 }
 0x155   : > { %v608_v10 = vcombine.low %v583_v60, %v591_v61 }
 0x156   : > { %v616_v8 = vcombine.low %v599_v54, %v607_v55 }
 0x157   : > { %v615_v17 = vrot.slane %v608_v10, %v1852_v29 }
 0x158   : > { %v623_v14 = vrot.slane %v616_v8, %v1852_v29 }
 0x15a   : > { %v624_v21 = vcombine.low %v615_v17, %v623_v14  ;;  %v625_v22 = vcombine.high %v615_v17, %v623_v14 }
 0x15c   : > { %v870_v25 = vmul.f32 0.25, %v624_v21  ;;  %v871_v26 = vmul.f32 0.25, %v625_v22 }
 0x15e   : > { %v872_v27 = vpack.c.bf16 %v870_v25, %v870_v25  ;;  %v873_v28 = vpack.c.bf16 %v871_v26, %v871_v26 }
 0x1bc   : > { %v629_v38 = vpop.permute.xlu1 %628 }
 0x1bd   : > { %v647_v40 = vcombine.high %v629_v38, %v1715_v1  ;;  %v654_v41 = vrot.slane %v629_v38, %v1844_v19 }
 0x1bf   : > { %v661_v45 = vrot.slane %v647_v40, %v1844_v19  ;;  %v662_v46 = vcombine.low %v639_v39, %v654_v41  ;;  %v663_v47 = vcombine.high %v639_v39, %v654_v41 }
 0x1c1   : > { %v670_v50 = vrot.slane %v662_v46, %v1852_v29  ;;  %v677_v51 = vrot.slane %v663_v47, %v1852_v29  ;;  %v678_v52 = vcombine.low %v646_v44, %v661_v45  ;;  %v679_v53 = vcombine.high %v646_v44, %v661_v45 }
 0x1c3   : > { %v686_v56 = vrot.slane %v678_v52, %v1852_v29  ;;  %v693_v57 = vrot.slane %v679_v53, %v1852_v29  ;;  %v698_v58 = vcombine.low %v670_v50, %v677_v51  ;;  %v1557_v59 = vcombine.high %v670_v50, %v677_v51 }
 0x1c5   : > { %v714_v62 = vcombine.low %v686_v56, %v693_v57  ;;  %v1558_v63 = vcombine.high %v686_v56, %v693_v57  ;;  %v705_v0 = vrot.slane %v698_v58, %v1844_v19  ;;  %v713_v2 = vrot.slane %v1557_v59, %v1844_v19 }
 0x1c7   : > { %v721_v4 = vrot.slane %v714_v62, %v1844_v19  ;;  %v729_v5 = vrot.slane %v1558_v63, %v1844_v19  ;;  %v730_v6 = vcombine.low %v705_v0, %v713_v2 }
 0x1c9   : > { %v738_v9 = vcombine.low %v721_v4, %v729_v5  ;;  %v737_v12 = vrot.slane %v730_v6, %v1852_v29 }
 0x1cb   : > { %v745_v13 = vrot.slane %v738_v9, %v1852_v29 }
 0x1cd   : > { %v746_v15 = vcombine.low %v737_v12, %v745_v13  ;;  %v747_v16 = vcombine.high %v737_v12, %v745_v13 }
 0x1cf   : > { %v874_v18 = vpack.c.bf16 %v746_v15, %v746_v15  ;;  %v875_v20 = vpack.c.bf16 %v747_v16, %v747_v16 }
 0x1d1   : > { %v881_v23 = vsel %vm876_vm2, %v874_v18, 0  ;;  %v927_v24 = vsel %vm876_vm2, %v875_v20, 0 }
 0x1d2   : > { %1618 = vmatpush3.bf16.xpose.msra.mxu1 %v881_v23  ;;  %1624 = vmatpush3.bf16.xpose.msra.mxu0 %v927_v24 }
 0x1d3   : > { %1629 = vmatprep.subr.bf16.mxu1 %v1715_v1  ;;  %1635 = vmatprep.subr.bf16.mxu0 %v1715_v1 }
 0x1d9   : > { %1620 = vmatmul.mubr.msk.bf16.vlgmr.msra.gmra.mxu1 %vm876_vm2, %v872_v27  ;;  %1626 = vmatmul.mubr.msk.bf16.vlgmr.msra.gmra.mxu0 %vm876_vm2, %v873_v28 }
 0x1da   : > { %1631 = vmatprep.mubr.msk.bf16.mxu1 %vm1716_vm0, %v1715_v1  ;;  %1637 = vmatprep.mubr.msk.bf16.mxu0 %vm1716_vm0, %v1715_v1 }
 0x299   : > { %v917_v30 = vpop.f32.mrf.mxu1  ;;  %v963_v31 = vpop.f32.mrf.mxu0 }
 0x29a   : > { %v970_v32 = vsel %vm969_vm3, %v917_v30, -inf  ;;  %v973_v33 = vsel %vm969_vm3, %v963_v31, -inf }
 0x29b   : > { %971 = vmax.xlane.f32.xlu1 %v970_v32  ;;  %v1621_v34 = vpop.f32.mrf.mxu1  ;;  %974 = vmax.xlane.f32.xlu0 %v973_v33  ;;  %v1627_v35 = vpop.f32.mrf.mxu0  ;;  %v1687_v32 = vld [vmem:[%s2009_s3 + $0x8] sm:$0xff]  }
 0x29d   : > { %v920_v36 = vpop.f32.mrf.mxu1  ;;  %v966_v37 = vpop.f32.mrf.mxu0 }
 0x29f   : > { %v1622_v38 = vpop.f32.mrf.mxu1  ;;  %v1628_v39 = vpop.f32.mrf.mxu0 }
 0x324   : > { %v972_v40 = vpop.xlane.xlu1 %971  ;;  %v975_v41 = vpop.xlane.xlu0 %974 }
 0x325   : > { %v976_v42 = vsub.f32 %v917_v30, %v972_v40  ;;  %v977_v43 = vsub.f32 %v963_v31, %v975_v41 }
 0x327   : > { %v978_v44 = vmul.f32 1.442695, %v976_v42  ;;  %v980_v45 = vmul.f32 1.442695, %v977_v43 }
 0x329   : > { %1695 = vpow2.f32 %v978_v44 }
 0x32a   : > { %1697 = vpow2.f32 %v980_v45 }
 0x336   : > { %v1696_v46 = vpop.eup %1695 }
 0x337   : > { %v1698_v47 = vpop.eup %1697  ;;  %v982_v48 = vsel %vm969_vm3, %v1696_v46, 0.0 }
 0x338   : > { %983 = vadd.xlane.f32.xlu0 %v982_v48  ;;  %v985_v49 = vsel %vm969_vm3, %v1698_v47, 0.0 }
 0x339   : > { %986 = vadd.xlane.f32.xlu1 %v985_v49 }
 0x34a   : > { %750 = vrot.lane.b32.xlu1 %v1837_v11, %s1721_s22 }
 0x34e   : > { %748 = vrot.lane.b32.xlu0 %v1833_v7, %s1721_s22 }
 0x3c1   : > { %v984_v50 = vpop.xlane.xlu0 %983 }
 0x3c2   : > { %v987_v51 = vpop.xlane.xlu1 %986  ;;  %1699 = vrcp.f32 %v984_v50 }
 0x3c3   : > { %1701 = vrcp.f32 %v987_v51 }
 0x3c5   : > { %v749_v52 = vpop.permute.xlu0 %748 }
 0x3c6   : > { %v751_v53 = vpop.permute.xlu1 %750  ;;  %v754_v54 = vcombine.high %v749_v52, %v1715_v1  ;;  %v761_v55 = vrot.slane %v749_v52, %v1844_v19 }
 0x3c7   : > { %v769_v56 = vcombine.high %v751_v53, %v1715_v1  ;;  %v776_v57 = vrot.slane %v751_v53, %v1844_v19 }
 0x3c8   : > { %v768_v58 = vrot.slane %v754_v54, %v1844_v19 }
 0x3c9   : > { %v783_v11 = vrot.slane %v769_v56, %v1844_v19  ;;  %v784_v59 = vcombine.low %v761_v55, %v776_v57  ;;  %v785_v7 = vcombine.high %v761_v55, %v776_v57 }
 0x3cb   : > { %v792_v60 = vrot.slane %v784_v59, %v1852_v29  ;;  %v799_v61 = vrot.slane %v785_v7, %v1852_v29  ;;  %v800_v62 = vcombine.low %v768_v58, %v783_v11  ;;  %v801_v63 = vcombine.high %v768_v58, %v783_v11 }
 0x3cd   : > { %v808_v0 = vrot.slane %v800_v62, %v1852_v29  ;;  %v815_v2 = vrot.slane %v801_v63, %v1852_v29  ;;  %v820_v4 = vcombine.low %v792_v60, %v799_v61  ;;  %v1559_v5 = vcombine.high %v792_v60, %v799_v61 }
 0x3cf   : > { %v827_v6 = vrot.slane %v820_v4, %v1844_v19  ;;  %v835_v8 = vrot.slane %v1559_v5, %v1844_v19  ;;  %v836_v9 = vcombine.low %v808_v0, %v815_v2  ;;  %v1560_v10 = vcombine.high %v808_v0, %v815_v2  ;;  %v1700_v16 = vpop.eup %1699 }
 0x3d0   : > { %v1702_v20 = vpop.eup %1701  ;;  %v990_v25 = vmul.f32 %v1700_v16, %v1696_v46 }
 0x3d1   : > { %v843_v12 = vrot.slane %v836_v9, %v1844_v19  ;;  %v851_v13 = vrot.slane %v1560_v10, %v1844_v19  ;;  %v852_v14 = vcombine.low %v827_v6, %v835_v8  ;;  %v991_v26 = vmul.f32 %v1702_v20, %v1698_v47  ;;  %v1688_v47 = vld [vmem:[%s2009_s3] sm:$0xff]  }
 0x3d2   : > { %v992_v30 = vpack.c.bf16 %v990_v25, %v990_v25  ;;  %v1692_v25 = vld [vmem:[%s2015_s9 + $0x10] sm:$0xff]  }
 0x3d3   : > { %v860_v15 = vcombine.low %v843_v12, %v851_v13  ;;  %v859_v17 = vrot.slane %v852_v14, %v1852_v29  ;;  %v993_v31 = vpack.c.bf16 %v991_v26, %v991_v26 }
 0x3d5   : > { %v867_v18 = vrot.slane %v860_v15, %v1852_v29 }
 0x3d7   : > { %v868_v21 = vcombine.low %v859_v17, %v867_v18  ;;  %v869_v22 = vcombine.high %v859_v17, %v867_v18 }
 0x3d9   : > { %v994_v23 = vpack.c.bf16 %v868_v21, %v868_v21  ;;  %v995_v24 = vpack.c.bf16 %v869_v22, %v869_v22 }
 0x3db   : > { %v1001_v27 = vsel %vm999_vm4, %v994_v23, 0  ;;  %v1047_v28 = vsel %vm999_vm4, %v995_v24, 0  ;;  %v1689_v23 = vld [vmem:[%s2013_s7 + $0x8] sm:$0xff]   ;;  %v1691_v24 = vld [vmem:[%s2015_s9 + $0x18] sm:$0xff]  }
 0x3dc   : > { %1630 = vmatpush3.bf16.msra.mxu1 %v1001_v27  ;;  %1636 = vmatpush3.bf16.msra.mxu0 %v1047_v28 }
 0x3dd   : > { %1641 = vmatprep.subr.bf16.mxu1 %v1715_v1  ;;  %1649 = vmatprep.subr.bf16.mxu0 %v1715_v1 }
 0x3df   : > { %1632 = vmatmul.mubr.msk.bf16.vlgmr.msra.gmra.mxu1 %vm969_vm3, %v992_v30  ;;  %1638 = vmatmul.mubr.msk.bf16.vlgmr.msra.gmra.mxu0 %vm969_vm3, %v993_v31  ;;  %v1571_v31 = vld [vmem:[%s2011_s5] ss:$0 sm:$0xff] }
 0x3e0   : > { %1645 = vmatprep.mubr.msk.bf16.mxu1 %vm1716_vm0, %v1715_v1  ;;  %1653 = vmatprep.mubr.msk.bf16.mxu0 %vm1716_vm0, %v1715_v1 }
 0x3e1   : > { %1642 = vmatpush3.bf16.msra.mxu1 %v1687_v32  ;;  %1650 = vmatpush3.bf16.msra.mxu0 %v1689_v23 }
 0x3e2   : > { %1643 = vmatprep.subr.bf16.mxu1 %v1715_v1  ;;  %1651 = vmatprep.subr.bf16.mxu0 %v1715_v1 }
 0x3e5   : > { %1644 = vmatpush3.bf16.msra.mxu1 %v1688_v47 }
 0x3e6   : > { %1657 = vmatprep.subr.bf16.mxu1 %v1715_v1 }
 0x49f   : > { %v1037_v33 = vpop.f32.mrf.mxu1  ;;  %v1083_v34 = vpop.f32.mrf.mxu0 }
 0x4a0   : > { %v1089_v35 = vcombine.high %v1037_v33, %v1715_v1  ;;  %v1096_v36 = vrot.slane %v1037_v33, %v1844_v19  ;;  %v1104_v37 = vcombine.high %v1083_v34, %v1715_v1  ;;  %v1111_v38 = vrot.slane %v1083_v34, %v1844_v19  ;;  %v1572_v33 = vld [vmem:[%s2012_s6] ss:$0 sm:$0xff] }
 0x4a1   : > { %v1633_v39 = vpop.f32.mrf.mxu1  ;;  %v1639_v40 = vpop.f32.mrf.mxu0 }
 0x4a2   : > { %v1103_v41 = vrot.slane %v1089_v35, %v1844_v19  ;;  %v1118_v42 = vrot.slane %v1104_v37, %v1844_v19  ;;  %v1119_v43 = vcombine.low %v1096_v36, %v1111_v38  ;;  %v1120_v44 = vcombine.high %v1096_v36, %v1111_v38  ;;  %v1693_v37 = vld [vmem:[%s2015_s9 + $0x8] sm:$0xff]   ;;  %v1694_v38 = vld [vmem:[%s2015_s9] sm:$0xff]  }
 0x4a3   : > { %v1040_v45 = vpop.f32.mrf.mxu1  ;;  %v1086_v46 = vpop.f32.mrf.mxu0  ;;  %v1573_v39 = vld [vmem:[%s2014_s8] ss:$0 sm:$0xff] }
 0x4a4   : > { %v1127_v48 = vrot.slane %v1119_v43, %v1852_v29  ;;  %v1134_v49 = vrot.slane %v1120_v44, %v1852_v29  ;;  %v1135_v50 = vcombine.low %v1103_v41, %v1118_v42  ;;  %v1136_v51 = vcombine.high %v1103_v41, %v1118_v42 }
 0x4a5   : > { %v1634_v52 = vpop.f32.mrf.mxu1  ;;  %v1640_v53 = vpop.f32.mrf.mxu0 }
 0x4a6   : > { %v1143_v54 = vrot.slane %v1135_v50, %v1852_v29  ;;  %v1150_v55 = vrot.slane %v1136_v51, %v1852_v29  ;;  %v1155_v56 = vcombine.low %v1127_v48, %v1134_v49  ;;  %v1565_v57 = vcombine.high %v1127_v48, %v1134_v49 }
 0x4a8   : > { %v1162_v58 = vrot.slane %v1155_v56, %v1844_v19  ;;  %v1170_v11 = vrot.slane %v1565_v57, %v1844_v19  ;;  %v1171_v59 = vcombine.low %v1143_v54, %v1150_v55  ;;  %v1566_v7 = vcombine.high %v1143_v54, %v1150_v55 }
 0x4aa   : > { %v1178_v60 = vrot.slane %v1171_v59, %v1844_v19  ;;  %v1186_v61 = vrot.slane %v1566_v7, %v1844_v19  ;;  %v1187_v62 = vcombine.low %v1162_v58, %v1170_v11  ;;  %v1567_v19 = vld [vmem:[%s2010_s4] ss:$0 sm:$0xff] }
 0x4ac   : > { %v1195_v63 = vcombine.low %v1178_v60, %v1186_v61  ;;  %v1194_v0 = vrot.slane %v1187_v62, %v1852_v29  ;;  %v1583_v61 = vld [vmem:[%s2017_s11] ss:$0 sm:$0xff] }
 0x4ae   : > { %v1202_v2 = vrot.slane %v1195_v63, %v1852_v29  ;;  %v1584_v63 = vld [vmem:[%s2018_s12] ss:$0 sm:$0xff] }
 0x4b0   : > { %v1204_v4 = vcombine.high %v1194_v0, %v1202_v2  ;;  %v1203_v5 = vcombine.low %v1194_v0, %v1202_v2 }
 0x4b2   : > { %1206 = vrot.lane.b32.xlu1 %v1204_v4, %s1722_s29 }
 0x524   : > { %v1207_v6 = vpop.permute.xlu1 %1206 }
 0x525   : > { %v1209_v8 = vsel %vm876_vm2, %v1203_v5, %v1207_v6 }
 0x526   : > { %v1210_v9 = vpack.c.bf16 %v1209_v8, %v1209_v8 }
 0x528   : > { %1646 = vmatmul.mubr.msk.bf16.vlgmr.msra.gmra.mxu1 %vm462_vm1, %v1210_v9 }
 0x529   : > { %1665 = vmatprep.mubr.msk.bf16.mxu1 %vm1716_vm0, %v1715_v1  ;;  %1658 = vmatpush3.bf16.msra.mxu1 %v1691_v24 }
 0x52a   : > { %1659 = vmatprep.subr.bf16.mxu1 %v1715_v1 }
 0x52d   : > { %1660 = vmatpush3.bf16.msra.mxu1 %v1692_v25 }
 0x52e   : > { %1661 = vmatprep.subr.bf16.mxu1 %v1715_v1 }
 0x531   : > { %1662 = vmatpush3.bf16.msra.mxu1 %v1693_v37 }
 0x532   : > { %1663 = vmatprep.subr.bf16.mxu1 %v1715_v1  ;;  %v1577_v1 = vld [vmem:[%s2016_s10] ss:$0 sm:$0xff] }
 0x535   : > { %1664 = vmatpush3.bf16.msra.mxu1 %v1694_v38 }
 0x5e8   : > { %v1271_v10 = vpop.f32.mrf.mxu1 }
 0x5e9   : > { %v1272_v12 = vadd.f32 %v1567_v19, %v1271_v10 }
 0x5ea   : > { %v1647_v29 = vpop.f32.mrf.mxu1 }
 0x5eb   : > { %v1277_v13 = vadd.f32 %v1272_v12, %v1823_v3  ;;  %v1690_v3 = vld [vmem:[%s2013_s7] sm:$0xff]  }
 0x5ec   : > { %v1274_v14 = vpop.f32.mrf.mxu1  ;;  %1652 = vmatpush3.bf16.msra.mxu0 %v1690_v3 }
 0x5ed   : > { %v1280_v15 = vsel %vm462_vm1, %v1277_v13, 0.0 }
 0x5ee   : > { %1281 = vadd.xlane.f32.xlu0 %v1280_v15  ;;  %v1648_v16 = vpop.f32.mrf.mxu1 }
 0x677   : > { %v1282_v17 = vpop.xlane.xlu0 %1281 }
 0x678   : > { %v1284_v18 = vmul.f32 0.03125, %v1282_v17 }
 0x67a   : > { %v1285_v20 = vsub.f32 %v1277_v13, %v1284_v18 }
 0x67c   : > { %v1286_v21 = vmul.f32 %v1285_v20, %v1285_v20 }
 0x67e   : > { %v1287_v22 = vsel %vm462_vm1, %v1286_v21, 0.0 }
 0x67f   : > { %1288 = vadd.xlane.f32.xlu1 %v1287_v22 }
 0x708   : > { %v1289_v26 = vpop.xlane.xlu1 %1288 }
 0x709   : > { %v1290_v27 = vmul.f32 0.03125, %v1289_v26 }
 0x70b   : > { %v1291_v28 = vadd.f32 1e-05, %v1290_v27 }
 0x70d   : > { %1703 = vrsqrt.f32 %v1291_v28 }
 0x71a   : > { %v1704_v30 = vpop.eup %1703 }
 0x71b   : > { %v1293_v32 = vmul.f32 %v1704_v30, %v1285_v20 }
 0x71d   : > { %v1300_v34 = vmul.f32 %v1571_v31, %v1293_v32 }
 0x71f   : > { %v1307_v35 = vadd.f32 %v1572_v33, %v1300_v34 }
 0x721   : > { %v1308_v36 = vpack.c.bf16 %v1307_v35, %v1307_v35 }
 0x723   : > { %1654 = vmatmul.mubr.msk.bf16.vlgmr.msra.gmra.mxu0 %vm462_vm1, %v1308_v36 }
 0x7e3   : > { %v1369_v40 = vpop.f32.mrf.mxu0 }
 0x7e4   : > { %v1370_v41 = vadd.f32 %v1573_v39, %v1369_v40 }
 0x7e5   : > { %v1655_v42 = vpop.f32.mrf.mxu0 }
 0x7e6   : > { %v1375_v43 = vmax.f32 %v1370_v41, 0.0 }
 0x7e7   : > { %v1372_v44 = vpop.f32.mrf.mxu0 }
 0x7e8   : > { %v1376_v45 = vpack.c.bf16 %v1375_v43, %v1375_v43 }
 0x7e9   : > { %v1656_v46 = vpop.f32.mrf.mxu0 }
 0x7ea   : > { %1666 = vmatmul.mubr.msk.bf16.vlgmr.msra.gmra.mxu1 %vm1416_vm5, %v1376_v45 }
 0x8aa   : > { %v1454_v47 = vpop.f32.mrf.mxu1 }
 0x8ab   : > { %v1455_v48 = vadd.f32 %v1577_v1, %v1454_v47 }
 0x8ac   : > { %v1667_v49 = vpop.f32.mrf.mxu1 }
 0x8ad   : > { %v1460_v50 = vadd.f32 %v1455_v48, %v1307_v35 }
 0x8ae   : > { %v1457_v51 = vpop.f32.mrf.mxu1 }
 0x8af   : > { %v1463_v52 = vsel %vm462_vm1, %v1460_v50, 0.0 }
 0x8b0   : > { %1464 = vadd.xlane.f32.xlu0 %v1463_v52  ;;  %v1668_v53 = vpop.f32.mrf.mxu1 }
 0x939   : > { %v1465_v54 = vpop.xlane.xlu0 %1464 }
 0x93a   : > { %v1466_v55 = vmul.f32 0.03125, %v1465_v54 }
 0x93c   : > { %v1467_v56 = vsub.f32 %v1460_v50, %v1466_v55 }
 0x93e   : > { %v1468_v57 = vmul.f32 %v1467_v56, %v1467_v56 }
 0x940   : > { %v1469_v58 = vsel %vm462_vm1, %v1468_v57, 0.0 }
 0x941   : > { %1470 = vadd.xlane.f32.xlu0 %v1469_v58 }
 0x9ca   : > { %v1471_v11 = vpop.xlane.xlu0 %1470 }
 0x9cb   : > { %v1472_v59 = vmul.f32 0.03125, %v1471_v11 }
 0x9cd   : > { %v1473_v7 = vadd.f32 1e-05, %v1472_v59 }
 0x9cf   : > { %1705 = vrsqrt.f32 %v1473_v7 }
 0x9dc   : > { %v1706_v60 = vpop.eup %1705 }
 0x9dd   : > { %v1475_v62 = vmul.f32 %v1706_v60, %v1467_v56 }
 0x9df   : > { %v1482_v0 = vmul.f32 %v1583_v61, %v1475_v62 }
 0x9e1   : > { %v1489_v2 = vadd.f32 %v1584_v63, %v1482_v0 }
 0x9e3   : > { %1490 = vst.msk [vmem:[%s435_s30] sm:$0xff] %vm462_vm1, %v1489_v2 }
 0x9e4 PF: > { %s23_s25 = sadd.s32 1, %s1713_s25  }
 0x9e5   : > { %p20_p4 = scmp.ge.s32.totalorder %s23_s25, 4  }
 0x9e7   :  { %22 = sbr.rel (!%p20_p4) target bundleno = 1 (0x1), region = 102 }

</bundles_post_ra>
